<compile_context>
chip_gen: v6e
topology: v6e:2x2x1
jax: 0.10.0
libtpu: 0.0.40
codegen_flags: <defaults>
</compile_context>

<pallas_src>
import functools

import jax
import jax.numpy as jnp
from jax import lax
from jax.experimental import pallas as pl
from jax.experimental.pallas import tpu as pltpu

LANE = 128


def _round_up(n, m):
    return ((n + m - 1) // m) * m


# ----------------------------------------------------------------------------
# Packed-tap LHS construction (no staging copy: the last tap is `cur` itself)
# ----------------------------------------------------------------------------
def _build_lhs(carry_ref, cur, *, pad1, dilation, ksize, TL):
    """LHS for one dilated causal conv over one time tile.

    carry_ref holds the last `pad1` rows of the previous tile (zeros on the
    first tile == causal zero padding); `cur` is the current tile (TL rows).
    Tap j reads rows [j*d, j*d+TL) of the virtual window [carry; cur]; tap
    k-1 is exactly `cur`, so no full-tile staging copy is ever made.
    """
    taps = []
    for j in range(ksize - 1):
        lead = min(pad1 - j * dilation, TL)          # rows taken from the carry
        parts = []
        if lead > 0:
            parts.append(carry_ref[pl.ds(j * dilation, lead), :])
        if TL - lead > 0:
            parts.append(lax.slice_in_dim(cur, 0, TL - lead, axis=0))
        taps.append(parts[0] if len(parts) == 1 else jnp.concatenate(parts, axis=0))
    taps.append(cur)
    return taps[0] if ksize == 1 else jnp.concatenate(taps, axis=1)


# ----------------------------------------------------------------------------
# Fused TemporalBlock kernel
# ----------------------------------------------------------------------------
def _temporal_block_kernel(x_ref, w1_ref, b1_ref, w2_ref, b2_ref, *rest,
                           TL, pad1, dilation, ksize, fuse_ds, sep_ds):
    """One time tile of one batch element of a full TemporalBlock.

    x_ref  : (1, TL, Cin_p)            current input tile
    w1_ref : (k*Cin_p, N1)             conv1 weights (taps packed along rows);
                                       N1 = 2*Cout_p when the downsample is fused
    b1_ref : (1, N1)                   f32 bias (|| downsample bias when fused)
    w2_ref : (k*Cout_p, Cout_p)        conv2 weights
    b2_ref : (1, Cout_p)               f32
    [wd_ref, bd_ref]                   only for a separate (non-fused) downsample
    o_ref  : (1, TL, Cout_p)           output tile
    xc_ref : (pad1_r, Cin_p)           carry: last pad1 input rows of prev tile
    hc_ref : (pad1_r, Cout_p)          carry: last pad1 conv1-output rows of prev tile
    """
    if sep_ds:
        wd_ref, bd_ref, o_ref, xc_ref, hc_ref = rest
    else:
        o_ref, xc_ref, hc_ref = rest
    cout_p = o_ref.shape[-1]
    t = pl.program_id(1)

    # First tile of each sequence: causal history (x and h at time < 0) is zero.
    @pl.when(t == 0)
    def _():
        xc_ref[...] = jnp.zeros(xc_ref.shape, xc_ref.dtype)
        hc_ref[...] = jnp.zeros(hc_ref.shape, hc_ref.dtype)

    x_cur = x_ref[0]                                            # (TL, Cin_p)

    # --- conv1 (+ bias + ReLU), optionally with the 1x1 downsample fused as
    #     extra output columns of the same MXU matmul.
    lhs1 = _build_lhs(xc_ref, x_cur, pad1=pad1, dilation=dilation,
                      ksize=ksize, TL=TL)
    pre1 = jnp.dot(lhs1, w1_ref[...], preferred_element_type=jnp.float32)
    pre1 = pre1 + b1_ref[...]
    if fuse_ds:
        h_f32 = jnp.maximum(pre1[:, :cout_p], 0.0)
        res = pre1[:, cout_p:]                                  # downsample(x) + bd
    else:
        h_f32 = jnp.maximum(pre1, 0.0)
        if sep_ds:
            res = jnp.dot(x_cur, wd_ref[...],
                          preferred_element_type=jnp.float32) + bd_ref[...]
        else:
            res = x_cur.astype(jnp.float32)
    # Intentional cast of the intermediate to the MXU operand dtype (bf16 path).
    h = h_f32.astype(x_cur.dtype)

    # --- conv2 (+ bias + ReLU)
    lhs2 = _build_lhs(hc_ref, h, pad1=pad1, dilation=dilation,
                      ksize=ksize, TL=TL)
    out = jnp.dot(lhs2, w2_ref[...], preferred_element_type=jnp.float32)
    out = jnp.maximum(out + b2_ref[...], 0.0)

    # --- residual add + final ReLU
    o_ref[0] = jnp.maximum(out + res, 0.0).astype(o_ref.dtype)

    # --- carry the last pad1 rows of x and h forward to the next time tile.
    if 0 < pad1 <= TL:
        xc_ref[pl.ds(0, pad1), :] = lax.slice_in_dim(x_cur, TL - pad1, TL, axis=0)
        hc_ref[pl.ds(0, pad1), :] = lax.slice_in_dim(h, TL - pad1, TL, axis=0)


# ----------------------------------------------------------------------------
# Tile-size selection and VMEM-limit estimate
# ----------------------------------------------------------------------------
def _choose_tl(L, pad1, time_tile):
    """Time tile: must divide L, be sublane aligned and >= pad1 (so one carry
    buffer of pad1 rows covers the causal halo). Picks the smallest legal tile
    >= time_tile, else the largest legal tile, else the whole sequence."""
    cands = [t for t in range(8, L + 1, 8) if L % t == 0 and t >= pad1]
    if not cands:
        return L
    geq = [t for t in cands if t >= time_tile]
    return min(geq) if geq else max(cands)


def _auto_vmem_limit(TL, cin_p, cout_p, ksize, n1, itemsize, pad1_r, sep_ds):
    blocks = 2 * TL * (cin_p + cout_p) * itemsize              # x + out (double-buffered)
    weights = 2 * (ksize * cin_p * n1 + ksize * cout_p * cout_p) * itemsize
    weights += 2 * (n1 + cout_p) * 4                           # f32 biases
    if sep_ds:
        weights += 2 * (cin_p * cout_p * itemsize + cout_p * 4)
    carry = pad1_r * (cin_p + cout_p) * itemsize
    temps = TL * ksize * (cin_p + cout_p) * itemsize           # lhs1 / lhs2
    temps += TL * (n1 + 3 * cout_p) * 4                        # pre1 / h / out / res (f32)
    est = blocks + weights + carry + temps
    return int(min(max(32 << 20, 2 * est), 100 << 20))


# ----------------------------------------------------------------------------
# pallas_call wrapper for one TemporalBlock
# ----------------------------------------------------------------------------
def temporal_block_pallas(x_nlc, layer, *, time_tile=512, vmem_limit_bytes=None):
    """x_nlc: (B, L, Cin_p) lane-padded activations -> (B, L, Cout_p)."""
    B, L, cin_p = x_nlc.shape
    cout_p = layer["cout_p"]
    k = layer["ksize"]
    d = layer["dilation"]
    pad1 = (k - 1) * d
    fuse_ds = layer["fuse_ds"]
    sep_ds = layer["wdp"] is not None

    TL = _choose_tl(L, pad1, time_tile)
    T = L // TL
    pad1_r = max(8, _round_up(max(pad1, 1), 8))
    n1 = layer["w1p"].shape[1]                  # cout_p or 2*cout_p (fused downsample)

    kern = functools.partial(
        _temporal_block_kernel, TL=TL, pad1=pad1, dilation=d, ksize=k,
        fuse_ds=fuse_ds, sep_ds=sep_ds)

    in_specs = [
        pl.BlockSpec((1, TL, cin_p), lambda b, t: (b, t, 0)),   # O(TL) residency
        pl.BlockSpec((k * cin_p, n1), lambda b, t: (0, 0)),
        pl.BlockSpec((1, n1), lambda b, t: (0, 0)),
        pl.BlockSpec((k * cout_p, cout_p), lambda b, t: (0, 0)),
        pl.BlockSpec((1, cout_p), lambda b, t: (0, 0)),
    ]
    args = [x_nlc, layer["w1p"], layer["b1p"], layer["w2p"], layer["b2p"]]
    if sep_ds:
        in_specs += [
            pl.BlockSpec((cin_p, cout_p), lambda b, t: (0, 0)),
            pl.BlockSpec((1, cout_p), lambda b, t: (0, 0)),
        ]
        args += [layer["wdp"], layer["bdp"]]

    if vmem_limit_bytes is None:
        itemsize = jnp.dtype(x_nlc.dtype).itemsize
        vmem_limit_bytes = _auto_vmem_limit(TL, cin_p, cout_p, k, n1, itemsize,
                                            pad1_r, sep_ds)

    return pl.pallas_call(
        kern,
        out_shape=jax.ShapeDtypeStruct((B, L, cout_p), x_nlc.dtype),
        grid=(B, T),
        in_specs=in_specs,
        out_specs=pl.BlockSpec((1, TL, cout_p), lambda b, t: (b, t, 0)),
        scratch_shapes=[pltpu.VMEM((pad1_r, cin_p), x_nlc.dtype),   # x carry
                        pltpu.VMEM((pad1_r, cout_p), x_nlc.dtype)], # h carry
        compiler_params=pltpu.CompilerParams(
            dimension_semantics=("parallel", "arbitrary"),
            vmem_limit_bytes=vmem_limit_bytes),
    )(*args)


# ----------------------------------------------------------------------------
# Parameters: PyTorch-layout init (+ weight_norm) and kernel-layout packing
# ----------------------------------------------------------------------------
def weight_norm_weight(v, g):
    """PyTorch weight_norm (dim=0): w = g * v / ||v||, norm over (in, k) per out-chan."""
    norm = jnp.sqrt(jnp.sum(v * v, axis=(1, 2), keepdims=True))
    return g[:, None, None] * v / norm


def init_tcn_params(key, num_inputs, num_channels, kernel_size):
    params = []
    for i, cout in enumerate(num_channels):
        cin = num_inputs if i == 0 else num_channels[i - 1]
        key, k1, k2, k3, k4, k5, k6 = jax.random.split(key, 7)
        v1 = 0.01 * jax.random.normal(k1, (cout, cin, kernel_size), jnp.float32)
        v2 = 0.01 * jax.random.normal(k2, (cout, cout, kernel_size), jnp.float32)
        g1 = jnp.sqrt(jnp.sum(v1 * v1, axis=(1, 2)))   # weight_norm init: g = ||v||
        g2 = jnp.sqrt(jnp.sum(v2 * v2, axis=(1, 2)))
        p = {
            "w1": weight_norm_weight(v1, g1),          # (Cout, Cin, k) PyTorch OIK
            "b1": 0.05 * jax.random.normal(k3, (cout,), jnp.float32),
            "w2": weight_norm_weight(v2, g2),          # (Cout, Cout, k)
            "b2": 0.05 * jax.random.normal(k4, (cout,), jnp.float32),
            "dilation": 2 ** i,
        }
        if cin != cout:
            p["wd"] = 0.01 * jax.random.normal(k5, (cout, cin, 1), jnp.float32)
            p["bd"] = 0.05 * jax.random.normal(k6, (cout,), jnp.float32)
        else:
            p["wd"] = None
            p["bd"] = None
        params.append(p)
    return params


def _pad_to(a, rows, cols):
    return jnp.pad(a, ((0, rows - a.shape[0]), (0, cols - a.shape[1])))


def pack_tcn_params(params, dtype=jnp.bfloat16, fuse_downsample=True):
    """Hoisted weight preprocessing: taps packed along the MXU contraction dim,
    lanes padded to 128, 1x1 downsample optionally fused into conv1's output
    columns (only when that keeps matmul N <= 256)."""
    packed = []
    for p in params:
        cout, cin, k = p["w1"].shape
        cin_p, cout_p = _round_up(cin, LANE), _round_up(cout, LANE)
        has_ds = p["wd"] is not None
        fuse_ds = bool(fuse_downsample and has_ds and cout_p <= LANE)

        w1_taps = [_pad_to(p["w1"][:, :, j].T, cin_p, cout_p) for j in range(k)]
        if fuse_ds:
            wd_t = _pad_to(p["wd"][:, :, 0].T, cin_p, cout_p)
            zeros = jnp.zeros((cin_p, cout_p), jnp.float32)
            w1_taps = [jnp.concatenate([w1_taps[j], wd_t if j == k - 1 else zeros],
                                       axis=1) for j in range(k)]
            b1p = jnp.concatenate([_pad_to(p["b1"][None, :], 1, cout_p),
                                   _pad_to(p["bd"][None, :], 1, cout_p)], axis=1)
        else:
            b1p = _pad_to(p["b1"][None, :], 1, cout_p)
        w1p = jnp.concatenate(w1_taps, axis=0)
        w2p = jnp.concatenate([_pad_to(p["w2"][:, :, j].T, cout_p, cout_p)
                               for j in range(k)], axis=0)

        layer = {
            "w1p": w1p.astype(dtype),
            "b1p": b1p.astype(jnp.float32),
            "w2p": w2p.astype(dtype),
            "b2p": _pad_to(p["b2"][None, :], 1, cout_p).astype(jnp.float32),
            "dilation": p["dilation"], "ksize": k, "fuse_ds": fuse_ds,
            "cin": cin, "cout": cout, "cin_p": cin_p, "cout_p": cout_p,
        }
        if has_ds and not fuse_ds:
            layer["wdp"] = _pad_to(p["wd"][:, :, 0].T, cin_p, cout_p).astype(dtype)
            layer["bdp"] = _pad_to(p["bd"][None, :], 1, cout_p).astype(jnp.float32)
        else:
            layer["wdp"] = None
            layer["bdp"] = None
        packed.append(layer)
    return packed


# ----------------------------------------------------------------------------
# Forward passes
# ----------------------------------------------------------------------------
def tcn_forward_pallas(x_ncl, packed_layers, *, time_tile=512, vmem_limit_bytes=None):
    """x_ncl: (B, C, L) as in PyTorch; returns (B, C_last, L) float32."""
    compute_dtype = packed_layers[0]["w1p"].dtype
    B, C0, L = x_ncl.shape
    cin_p = packed_layers[0]["cin_p"]
    # NCL -> NLC (channels on the lane axis) and a one-time lane pad to 128.
    # TODO(synk): callers that can supply/accept NLC activations directly would
    #             skip these two boundary transposes.
    x = jnp.transpose(x_ncl, (0, 2, 1)).astype(compute_dtype)
    x = jnp.pad(x, ((0, 0), (0, 0), (0, cin_p - C0)))
    for layer in packed_layers:
        x = temporal_block_pallas(x, layer, time_tile=time_tile,
                                  vmem_limit_bytes=vmem_limit_bytes)
    c_last = packed_layers[-1]["cout"]
    return jnp.transpose(x[:, :, :c_last], (0, 2, 1)).astype(jnp.float32)


def _conv1d_ref(x_ncl, w_oik, b, dilation, pad):
    out = jax.lax.conv_general_dilated(
        x_ncl, w_oik, window_strides=(1,), padding=[(pad, pad)],
        rhs_dilation=(dilation,), dimension_numbers=("NCH", "OIH", "NCH"))
    out = out + b[None, :, None]
    return out[:, :, : out.shape[2] - pad]  # Chomp1d


def tcn_forward_ref(x_ncl, params, kernel_size):
    x = x_ncl
    for p in params:
        d = p["dilation"]
        pad = (kernel_size - 1) * d
        o = jnp.maximum(_conv1d_ref(x, p["w1"], p["b1"], d, pad), 0.0)
        o = jnp.maximum(_conv1d_ref(o, p["w2"], p["b2"], d, pad), 0.0)
        if p["wd"] is not None:
            res = jnp.einsum("oi,bil->bol", p["wd"][:, :, 0], x) + p["bd"][None, :, None]
        else:
            res = x
        x = jnp.maximum(o + res, 0.0)
    return x


# ----------------------------------------------------------------------------
if __name__ == "__main__":
    B, num_inputs, L = 2, 4, 16
    num_channels = [8, 8, 16]   # exercises both downsample and identity residuals
    kernel_size = 2

    key = jax.random.PRNGKey(0)
    key, kx = jax.random.split(key)
    x = jax.random.normal(kx, (B, num_inputs, L), jnp.float32)   # PyTorch NCL

    params = init_tcn_params(key, num_inputs, num_channels, kernel_size)
    ref = tcn_forward_ref(x, params, kernel_size)

    # f32 path, fused downsample; time_tile=8 exercises the multi-tile carry path.
    packed_f32 = pack_tcn_params(params, dtype=jnp.float32)
    out = jax.block_until_ready(tcn_forward_pallas(x, packed_f32, time_tile=8))
    assert out.shape == (B, num_channels[-1], L), out.shape
    assert jnp.allclose(out, ref, atol=1e-4, rtol=1e-4), float(jnp.max(jnp.abs(out - ref)))

    # f32 path with the separate (non-fused) downsample matmul.
    packed_sep = pack_tcn_params(params, dtype=jnp.float32, fuse_downsample=False)
    out_sep = jax.block_until_ready(tcn_forward_pallas(x, packed_sep, time_tile=8))
    assert jnp.allclose(out_sep, ref, atol=1e-4, rtol=1e-4), \
        float(jnp.max(jnp.abs(out_sep - ref)))

    # Default bf16 inter-block activations (f32 accumulation / f32 epilogue).
    packed_bf16 = pack_tcn_params(params)
    out_bf = jax.block_until_ready(tcn_forward_pallas(x, packed_bf16, time_tile=8))
    assert jnp.allclose(out_bf, ref, atol=3e-2, rtol=3e-2), \
        float(jnp.max(jnp.abs(out_bf - ref)))

    print("KERNEL_OK")
</pallas_src>

<mosaic_0001>
module attributes {stable_mosaic.version = 11 : i64} {
  func.func @_temporal_block_kernel(%arg0: i32, %arg1: i32, %arg2: memref<1x8x128xf32, #tpu.memory_space<vmem>>, %arg3: memref<256x256xf32, #tpu.memory_space<vmem>>, %arg4: memref<1x256xf32, #tpu.memory_space<vmem>>, %arg5: memref<256x128xf32, #tpu.memory_space<vmem>>, %arg6: memref<1x128xf32, #tpu.memory_space<vmem>>, %arg7: memref<1x8x128xf32, #tpu.memory_space<vmem>>, %arg8: memref<8x128xf32, #tpu.memory_space<vmem>>, %arg9: memref<8x128xf32, #tpu.memory_space<vmem>>) attributes {dimension_semantics = [#tpu.dimension_semantics<parallel>, #tpu.dimension_semantics<arbitrary>], iteration_bounds = array<i64: 2, 2>, scalar_prefetch = 0 : i64, scratch_operands = 2 : i64, tpu.core_type = #tpu.core_type<tc>, window_params = [{transform_indices = @transform_0, window_bounds = array<i64: 1, 8, 128>}, {pipeline_mode = #tpu.pipeline_mode<synchronous>, transform_indices = @transform_1, window_bounds = array<i64: 256, 256>}, {pipeline_mode = #tpu.pipeline_mode<synchronous>, transform_indices = @transform_2, window_bounds = array<i64: 1, 256>}, {pipeline_mode = #tpu.pipeline_mode<synchronous>, transform_indices = @transform_3, window_bounds = array<i64: 256, 128>}, {pipeline_mode = #tpu.pipeline_mode<synchronous>, transform_indices = @transform_4, window_bounds = array<i64: 1, 128>}, {transform_indices = @transform_5, window_bounds = array<i64: 1, 8, 128>}]} {
    %c0_i32 = arith.constant 0 : i32
    %0 = arith.cmpi eq, %arg1, %c0_i32 : i32
    %1 = arith.extui %0 : i1 to i32
    %c0_i32_0 = arith.constant 0 : i32
    %2 = arith.cmpi ne, %1, %c0_i32_0 : i32
    scf.if %2 {
      %cst_26 = arith.constant 0.000000e+00 : f32
      %39 = vector.broadcast %cst_26 : f32 to vector<8x128xf32>
      %c0_27 = arith.constant 0 : index
      %c0_28 = arith.constant 0 : index
      %40 = vector.load %arg8[%c0_27, %c0_28] : memref<8x128xf32, #tpu.memory_space<vmem>>, vector<8x128xf32>
      tpu.vector_store %arg8[%c0_27, %c0_28], %39 {strides = array<i32>} : memref<8x128xf32, #tpu.memory_space<vmem>>, vector<8x128xf32>,
      %cst_29 = arith.constant 0.000000e+00 : f32
      %41 = vector.broadcast %cst_29 : f32 to vector<8x128xf32>
      %c0_30 = arith.constant 0 : index
      %c0_31 = arith.constant 0 : index
      %42 = vector.load %arg9[%c0_30, %c0_31] : memref<8x128xf32, #tpu.memory_space<vmem>>, vector<8x128xf32>
      tpu.vector_store %arg9[%c0_30, %c0_31], %41 {strides = array<i32>} : memref<8x128xf32, #tpu.memory_space<vmem>>, vector<8x128xf32>,
    } else {
    }
    %c0 = arith.constant 0 : index
    %c0_1 = arith.constant 0 : index
    %c0_2 = arith.constant 0 : index
    %3 = vector.load %arg2[%c0, %c0_1, %c0_2] : memref<1x8x128xf32, #tpu.memory_space<vmem>>, vector<1x8x128xf32>
    %4 = vector.shape_cast %3 : vector<1x8x128xf32> to vector<8x128xf32>
    %c0_3 = arith.constant 0 : index
    %c0_4 = arith.constant 0 : index
    %5 = vector.load %arg8[%c0_3, %c0_4] : memref<8x128xf32, #tpu.memory_space<vmem>>, vector<1x128xf32>
    %6 = vector.extract_strided_slice %4 {offsets = [0, 0], sizes = [7, 128], strides = [1, 1]} : vector<8x128xf32> to vector<7x128xf32>
    %7 = tpu.concatenate %5, %6 in 0 : vector<1x128xf32>, vector<7x128xf32> -> vector<8x128xf32>
    %8 = tpu.concatenate %7, %4 in 1 : vector<8x128xf32>, vector<8x128xf32> -> vector<8x256xf32>
    %c0_5 = arith.constant 0 : index
    %c0_6 = arith.constant 0 : index
    %9 = vector.load %arg3[%c0_5, %c0_6] : memref<256x256xf32, #tpu.memory_space<vmem>>, vector<256x256xf32>
    %cst = arith.constant dense<0.000000e+00> : vector<8x256xf32>
    %10 = tpu.matmul %8, %9, %cst {dimension_numbers = #tpu.dot_dimension_numbers<[1], [0], [0], [1], [0, 0, 1, 1], [], []>} : vector<8x256xf32>, vector<256x256xf32>, vector<8x256xf32> -> vector<8x256xf32>
    %c0_7 = arith.constant 0 : index
    %c0_8 = arith.constant 0 : index
    %11 = vector.load %arg4[%c0_7, %c0_8] : memref<1x256xf32, #tpu.memory_space<vmem>>, vector<1x256xf32>
    %12 = vector.broadcast %11 : vector<1x256xf32> to vector<8x256xf32>
    %13 = arith.addf %10, %12 : vector<8x256xf32>
    %14 = vector.extract_strided_slice %13 {offsets = [0, 0], sizes = [8, 128], strides = [1, 1]} : vector<8x256xf32> to vector<8x128xf32>
    %cst_9 = arith.constant 0.000000e+00 : f32
    %15 = vector.broadcast %cst_9 : f32 to vector<8x128xf32>
    %16 = arith.maximumf %14, %15 : vector<8x128xf32>
    %17 = vector.extract_strided_slice %13 {offsets = [0, 128], sizes = [8, 128], strides = [1, 1]} : vector<8x256xf32> to vector<8x128xf32>
    %c0_10 = arith.constant 0 : index
    %c0_11 = arith.constant 0 : index
    %18 = vector.load %arg9[%c0_10, %c0_11] : memref<8x128xf32, #tpu.memory_space<vmem>>, vector<1x128xf32>
    %19 = vector.extract_strided_slice %16 {offsets = [0, 0], sizes = [7, 128], strides = [1, 1]} : vector<8x128xf32> to vector<7x128xf32>
    %20 = tpu.concatenate %18, %19 in 0 : vector<1x128xf32>, vector<7x128xf32> -> vector<8x128xf32>
    %21 = tpu.concatenate %20, %16 in 1 : vector<8x128xf32>, vector<8x128xf32> -> vector<8x256xf32>
    %c0_12 = arith.constant 0 : index
    %c0_13 = arith.constant 0 : index
    %22 = vector.load %arg5[%c0_12, %c0_13] : memref<256x128xf32, #tpu.memory_space<vmem>>, vector<256x128xf32>
    %cst_14 = arith.constant dense<0.000000e+00> : vector<8x128xf32>
    %23 = tpu.matmul %21, %22, %cst_14 {dimension_numbers = #tpu.dot_dimension_numbers<[1], [0], [0], [1], [0, 0, 1, 1], [], []>} : vector<8x256xf32>, vector<256x128xf32>, vector<8x128xf32> -> vector<8x128xf32>
    %c0_15 = arith.constant 0 : index
    %c0_16 = arith.constant 0 : index
    %24 = vector.load %arg6[%c0_15, %c0_16] : memref<1x128xf32, #tpu.memory_space<vmem>>, vector<1x128xf32>
    %25 = vector.broadcast %24 : vector<1x128xf32> to vector<8x128xf32>
    %26 = arith.addf %23, %25 : vector<8x128xf32>
    %cst_17 = arith.constant 0.000000e+00 : f32
    %27 = vector.broadcast %cst_17 : f32 to vector<8x128xf32>
    %28 = arith.maximumf %26, %27 : vector<8x128xf32>
    %29 = arith.addf %28, %17 : vector<8x128xf32>
    %cst_18 = arith.constant 0.000000e+00 : f32
    %30 = vector.broadcast %cst_18 : f32 to vector<8x128xf32>
    %31 = arith.maximumf %29, %30 : vector<8x128xf32>
    %c0_19 = arith.constant 0 : index
    %c0_20 = arith.constant 0 : index
    %c0_21 = arith.constant 0 : index
    %32 = vector.load %arg7[%c0_19, %c0_20, %c0_21] : memref<1x8x128xf32, #tpu.memory_space<vmem>>, vector<1x8x128xf32>
    %33 = vector.shape_cast %32 : vector<1x8x128xf32> to vector<8x128xf32>
    %34 = vector.shape_cast %31 : vector<8x128xf32> to vector<1x8x128xf32>
    tpu.vector_store %arg7[%c0_19, %c0_20, %c0_21], %34 {strides = array<i32>} : memref<1x8x128xf32, #tpu.memory_space<vmem>>, vector<1x8x128xf32>,
    %35 = vector.extract_strided_slice %4 {offsets = [7, 0], sizes = [1, 128], strides = [1, 1]} : vector<8x128xf32> to vector<1x128xf32>
    %c0_22 = arith.constant 0 : index
    %c0_23 = arith.constant 0 : index
    %36 = vector.load %arg8[%c0_22, %c0_23] : memref<8x128xf32, #tpu.memory_space<vmem>>, vector<1x128xf32>
    tpu.vector_store %arg8[%c0_22, %c0_23], %35 {strides = array<i32>} : memref<8x128xf32, #tpu.memory_space<vmem>>, vector<1x128xf32>,
    %37 = vector.extract_strided_slice %16 {offsets = [7, 0], sizes = [1, 128], strides = [1, 1]} : vector<8x128xf32> to vector<1x128xf32>
    %c0_24 = arith.constant 0 : index
    %c0_25 = arith.constant 0 : index
    %38 = vector.load %arg9[%c0_24, %c0_25] : memref<8x128xf32, #tpu.memory_space<vmem>>, vector<1x128xf32>
    tpu.vector_store %arg9[%c0_24, %c0_25], %37 {strides = array<i32>} : memref<8x128xf32, #tpu.memory_space<vmem>>, vector<1x128xf32>,
    return
  }
  func.func @transform_0(%arg0: i32, %arg1: i32) -> (i32, i32, i32) {
    %c0_i32 = arith.constant 0 : i32
    %c0_i32_0 = arith.constant 0 : i32
    return %arg0, %arg1, %c0_i32 : i32, i32, i32
  }
  func.func @transform_1(%arg0: i32, %arg1: i32) -> (i32, i32) {
    %c0_i32 = arith.constant 0 : i32
    %c0_i32_0 = arith.constant 0 : i32
    %c0_i32_1 = arith.constant 0 : i32
    return %c0_i32, %c0_i32_0 : i32, i32
  }
  func.func @transform_2(%arg0: i32, %arg1: i32) -> (i32, i32) {
    %c0_i32 = arith.constant 0 : i32
    %c0_i32_0 = arith.constant 0 : i32
    %c0_i32_1 = arith.constant 0 : i32
    return %c0_i32, %c0_i32_0 : i32, i32
  }
  func.func @transform_3(%arg0: i32, %arg1: i32) -> (i32, i32) {
    %c0_i32 = arith.constant 0 : i32
    %c0_i32_0 = arith.constant 0 : i32
    %c0_i32_1 = arith.constant 0 : i32
    return %c0_i32, %c0_i32_0 : i32, i32
  }
  func.func @transform_4(%arg0: i32, %arg1: i32) -> (i32, i32) {
    %c0_i32 = arith.constant 0 : i32
    %c0_i32_0 = arith.constant 0 : i32
    %c0_i32_1 = arith.constant 0 : i32
    return %c0_i32, %c0_i32_0 : i32, i32
  }
  func.func @transform_5(%arg0: i32, %arg1: i32) -> (i32, i32, i32) {
    %c0_i32 = arith.constant 0 : i32
    %c0_i32_0 = arith.constant 0 : i32
    return %arg0, %arg1, %c0_i32 : i32, i32, i32
  }
}

</mosaic_0001>

<bundles_post_ra>
// kernel: tpu_custom_call.1
= control target key start
LH: loop header
LB: loop body
LE: loop exit
PB: predicated region body
PF: predicated region fallthrough
CT: control target
= control target key end

     0   :  { %s1293_s0 = inlined_call_operand.hbm [shape: f32[2,16,128], index: 0, kind: input, shape index: {}]   ;;  %s1294_s1 = inlined_call_operand.hbm [shape: f32[256,256], index: 1, kind: input, shape index: {}]   ;;  %s1295_s2 = inlined_call_operand.vmem [shape: f32[1,256], index: 2, kind: input, shape index: {}]   ;;  %s1296_s3 = inlined_call_operand.hbm [shape: f32[256,128], index: 3, kind: input, shape index: {}]   ;;  %s1297_s4 = inlined_call_operand.vmem [shape: f32[1,128], index: 4, kind: input, shape index: {}]   ;;  %s1298_s5 = inlined_call_operand.hbm [shape: f32[2,16,128], index: 5, kind: output, shape index: {}]  }
   0x1   :  { %1307 = sst [smem:[#allocation18_spill]] %s1294_s1 }
   0x2   :  { %1308 = sst [smem:[#allocation19_spill]] %s1296_s3 }
   0x3   :  { %1309 = sst [smem:[#allocation20_spill]] %s1298_s5 }
   0x4   :  { %10 = vsyncpa [#allocation5], 0 }
   0x5   :  { %12 = vsyncpa [#allocation5 + $0x1], 0 }
   0x6   :  { %13 = vsyncpa [#allocation8], 0 }
   0x7   :  { %14 = vsyncpa [#allocation6], 0 }
   0x8   :  { %16 = vsyncpa [#allocation6 + $0x1], 0  ;;  %s1069_s18 = smov 0   ;;  %s1071_s19 = smov 0  }
   0x9   :  { %s1073_s20 = smov 0   ;;  %s1075_s21 = smov 0  }
   0xa   :  { %s1077_s22 = smov 0   ;;  %s1079_s23 = smov 0  }
   0xb   :  { %s1081_s24 = smov 0   ;;  %s1083_s25 = smov 0  }
   0xc LB: > { %1310 = sst [smem:[#allocation14_spill]] %s1000_s18  ;;  %s688_s26 = sadd.s32 4294967295, %s1028_s25   ;;  %s1028_s25 = sphi %s1083_s25, %s22_s25   ;;  %s1024_s24 = sphi %s1081_s24, %s1337_s24   ;;  %s1020_s23 = sphi %s1079_s23, %s1336_s23   ;;  %s1016_s22 = sphi %s1077_s22, %s1335_s22   ;;  %s1012_s21 = sphi %s1075_s21, %s1334_s21   ;;  %s1008_s20 = sphi %s1073_s20, %s1333_s20   ;;  %s1004_s19 = sphi %s1071_s19, %s1332_s19   ;;  %s1000_s18 = sphi %s1069_s18, %s1331_s18  }
   0xd   : > { %s689_s27 = sadd.s32 4294967294, %s1028_s25   ;;  %p56_p0 = scmp.ne.s32.totalorder %s1004_s19, %s1000_s18 }
   0xe   : > { %p1115_p1 = scmp.eq.s32.totalorder %s688_s26, 0  ;;  %p172_p2 = scmp.eq.s32.totalorder %s689_s27, 3 }
   0xf   : > { %p690_p4 = scmp.ge.s32.totalorder %s1028_s25, 1  ;;  %p179_p6 = scmp.lt.s32.totalorder %s1028_s25, 5 }
  0x10   : > { %s1311_s28 = scalar_select %p1115_p1, 1, 0 }
  0x11   : > { %p1121_p3 = por %p1115_p1, %p56_p0  ;;  %p1126_p5 = por %p172_p2, %p56_p0 }
  0x12   : > { %p1131_p7 = pnand %p690_p4, %p179_p6  ;;  %s1030_s7 = smov [#allocation7]  }
  0x13   : > { %s1313_s30 = scalar_select %p1126_p5, 1, 0 }
  0x14   : > { %s191_s8 = sshll.u32 %s1030_s7, 4  ;;  %p756_p8 = pneg %p1131_p7  ;;  %s192_s8 = int_to_ptr.vmem [resolvable:$true] %s191_s8 }
  0x15   : > { %1314 = sst [smem:[#allocation15_spill]] %s1313_s30  ;;  %s1031_s10 = smov [#allocation9]  }
  0x16   : > { %p1139_p9 = pnand %p756_p8, %p1115_p1  ;;  %s207_s11 = sshll.u32 %s1031_s10, 4  ;;  %s208_s11 = int_to_ptr.vmem [resolvable:$true] %s207_s11 }
  0x17   : > { %s859_s12 = scalar_lea.vmem %s192_s8, 8192  ;;  %p867_p0 = scmp.lt.s32.totalorder %s192_s8, %s192_s8 }
  0x18   : > { %p850_p10 = pneg %p1139_p9  ;;  %p860_p11 = scmp.ne.s32.totalorder %s192_s8, %s859_s12 }
  0x19   : > { %p868_p2 = scmp.lt.s32.totalorder %s859_s12, %s859_s12 }
  0x1a   : > { %p862_p12 = pnand %p860_p11, %p850_p10 }
  0x1b   : > { %p869_p4 = por %p868_p2, %p867_p0 }
  0x1c   : > { %p863_p13 = pneg %p862_p12 }
  0x1e   : > { %p870_p6 = pnand %p869_p4, %p863_p13 }
  0x20   : > { %873 = shalt.err (!%p870_p6)
}
  0x21   : > { %s1032_s13 = smov 256   ;;  %s1033_s14 = smov 16  }
  0x22   : > { %s1317_s1 = sld [smem:[#allocation18_spill]]  ;;  %s885_s17 = scalar_lea.vmem %s208_s11, 4096 }
  0x23   : > { %p886_p8 = scmp.ne.s32.totalorder %s208_s11, %s885_s17  ;;  %p893_p5 = scmp.lt.s32.totalorder %s208_s11, %s208_s11 }
  0x24   : > { %p894_p1 = scmp.lt.s32.totalorder %s885_s17, %s885_s17 }
  0x25   : > { %p888_p11 = pnand %p886_p8, %p850_p10 }
  0x26   : > { %p895_p0 = por %p894_p1, %p893_p5 }
  0x27   : > { %p889_p12 = pneg %p888_p11 }
  0x28   : > { %759 = dma.hbm_to_vmem [thread:$0]  (!%p1139_p9), %s1317_s1, 8192, %s192_s8, [#allocation8], %s1032_s13, %s1032_s13, %s1033_s14  }
  0x29   : > { %p896_p13 = pnand %p895_p0, %p889_p12 }
  0x2b   : > { %899 = shalt.err (!%p896_p13)
}
  0x2c   : > { %s1034_s27 = smov 128   ;;  %s1035_s7 = smov 8  }
  0x2d   : > { %s1318_s3 = sld [smem:[#allocation19_spill]]  ;;  %p166_p1 = scmp.eq.s32.totalorder %s688_s26, 3 }
  0x2e   : > { %s31_s12 = sadd.s32 1, %s1020_s23  ;;  %s34_s13 = sadd.s32 1, %s1024_s24 }
  0x2f   : > { %p32_p5 = scmp.ge.s32.totalorder %s31_s12, 2  ;;  %p50_p10 = scmp.ne.s32.totalorder %s1008_s20, %s1004_s19 }
  0x30   : > { %p51_p2 = scmp.eq.s32.totalorder %s1028_s25, 0  ;;  %s43_s14 = sadd.s32 1, %s1008_s20 }
  0x31   : > { %s1339_s12 = smov (%p32_p5, %s31_s12), 0  ;;  %s1341_s13 = smov (!%p32_p5, %s34_s13), %s1024_s24 }
  0x32   : > { %1319 = sst [smem:[#allocation16_spill]] %s1339_s12  ;;  %s39_s9 = ssub.s32 %s1020_s23, %s1339_s12 }
  0x33   : > { %762 = dma.hbm_to_vmem [thread:$0]  (!%p1139_p9), %s1318_s3, 4096, %s208_s11, [#allocation8], %s1034_s27, %s1034_s27, %s1035_s7  }
  0x34   : > { %p36_p4 = scmp.ge.s32.totalorder %s1341_s13, 2  ;;  %p1174_p9 = por %p166_p1, %p50_p10 }
  0x35   : > { %p1178_p6 = por %p51_p2, %p50_p10  ;;  %s224_s15 = sand.u32 1, %s1008_s20  }
  0x36   : > { %s1320_s11 = scalar_select %p1174_p9, 1, 0 }
  0x37   : > { %s1343_s13 = smov (%p36_p4, %s1341_s13), 0  ;;  %p773_p8 = scmp.lt.s32.totalorder %s1028_s25, 4 }
  0x38   : > { %1321 = sst [smem:[#allocation17_spill]] %s1320_s11  ;;  %s694_s16 = sshll.u32 %s224_s15, 3 }
  0x39   : > { %s38_s17 = ssub.s32 %s1024_s24, %s1343_s13  ;;  %s695_s7 = sshll.u32 %s1024_s24, 1 }
  0x3a   : > { %s40_s27 = sor.u32 %s39_s9, %s38_s17  ;;  %s233_s8 = sadd.s32 %s1020_s23, %s695_s7 }
  0x3b   : > { %p41_p11 = scmp.eq.s32.totalorder %s40_s27, 0  ;;  %s696_s10 = sshll.u32 %s233_s8, 7 }
  0x3c   : > { %s228_s1 = scalar_lea.vmem [#allocation4], %s694_s16  ;;  %s235_s5 = scalar_lea.hbm %s1293_s0, %s696_s10 }
  0x3d   : > { %s237_s3 = sshll.u32 %s228_s1, 4  ;;  %p1200_p12 = pnand %p773_p8, %p1178_p6  ;;  %s238_s3 = int_to_ptr.vmem [resolvable:$true] %s237_s3 }
  0x3e   : > { %s1191_s12 = scalar_select %p41_p11, %s1008_s20, %s43_s14  }
  0x3f   : > { %s225_s9 = scalar_lea.sflag [#allocation5], %s224_s15  ;;  %p902_p0 = pneg %p1200_p12 }
  0x40   : > { %s913_s17 = scalar_lea.vmem %s238_s3, 128  ;;  %s1036_s1 = smov [#allocation4]  }
  0x41   : > { %p914_p13 = scmp.ne.s32.totalorder %s238_s3, %s913_s17  ;;  %s918_s14 = sshll.u32 %s1036_s1, 4  ;;  %s919_s14 = int_to_ptr.vmem [resolvable:$false] %s918_s14 }
  0x42   : > { %s920_s18 = scalar_lea.vmem %s919_s14, 256  ;;  %p921_p10 = scmp.lt.s32.totalorder %s238_s3, %s919_s14 }
  0x43   : > { %p916_p1 = pnand %p914_p13, %p902_p0  ;;  %p922_p2 = scmp.lt.s32.totalorder %s920_s18, %s913_s17 }
  0x45   : > { %p917_p5 = pneg %p916_p1  ;;  %p923_p4 = por %p922_p2, %p921_p10 }
  0x47   : > { %p924_p11 = pnand %p923_p4, %p917_p5 }
  0x49   : > { %927 = shalt.err (!%p924_p11)
}
  0x4a   : > { %766 = dma.hbm_to_vmem [thread:$0]  (!%p1200_p12), %s235_s5, 128, %s238_s3, %s225_s9  }
  0x4b   : > { %246 = sbr.rel (%p1131_p7) target bundleno = 576 (0x240), region = 40  ;;  %s1211_s30 = sand.u32 (!%p1131_p7), 1, %s1004_s19  }
  0x4c   : > { %s698_s26 = sshll.u32 (!%p1131_p7), %s1211_s30, 3  ;;  %s249_s15 = scalar_lea.sflag (!%p1131_p7), [#allocation5], %s1211_s30 }
  0x4d   : > { %s1215_s16 = scalar_lea.vmem (!%p1131_p7), [#allocation4], %s698_s26 }
  0x50   : > { %987 = dma.done.wait (%p1121_p3), %s249_s15, 128  }
  0x51   : > { %989 = vsyncadd (%p1121_p3), %s249_s15, 4294967168  ;;  %p1324_p6 = scmp.ne.s32.totalorder %s1311_s28, 0 }
  0x53   : > { %991 = dma.done.wait (%p1324_p6), [#allocation8], 12288  }
  0x54   : > { %993 = vsyncadd (%p1324_p6), [#allocation8], 4294955008  ;;  %s1225_s3 = scalar_lea.vmem [#allocation10], %s698_s26  ;;  %p702_p7 = scmp.ne.s32.totalorder %s1012_s21, 0 }
  0x56   : > { %290 = sbr.rel (%p702_p7) target bundleno = 93 (0x5d), region = 56 }
  0x5b   : > { %v1037_v0 = vmov 0.0  }
  0x5c   : > { %291 = vst [vmem:[#allocation2] sm:$0xff] %v1037_v0  ;;  %292 = vst [vmem:[#allocation3] sm:$0xff] %v1037_v0 }
  0x5d PF: > { %v331_v1 = vld [vmem:[#allocation7 + $0xf8] sm:$0xff]  ;;  %v330_v2 = vld [vmem:[#allocation7 + $0xf0] sm:$0xff]  ;;  %v329_v3 = vld [vmem:[#allocation7 + $0xe8] sm:$0xff]  ;;  %vm298_vm0 = vcmask 1040384   ;;  %s705_s11 = sshll.u32 %s1016_s22, 1  ;;  %s584_s10 = sshll.u32 %s1225_s3, 4  ;;  %s585_s10 = int_to_ptr.vmem [resolvable:$true] %s584_s10 }
  0x5e   : > { %376 = vmatprep.subr.mxu0 %v331_v1  ;;  %v328_v4 = vld [vmem:[#allocation7 + $0xe0] sm:$0xff]  ;;  %v327_v5 = vld [vmem:[#allocation7 + $0xd8] sm:$0xff]  ;;  %v326_v6 = vld [vmem:[#allocation7 + $0xd0] sm:$0xff]  ;;  %s580_s7 = sadd.s32 %s1012_s21, %s705_s11  ;;  %s1326_s1 = sld [smem:[#allocation20_spill]] }
  0x5f   : > { %377 = vmatpush1.msra.mxu0 %v330_v2  ;;  %v325_v7 = vld [vmem:[#allocation7 + $0xc8] sm:$0xff]  ;;  %v324_v8 = vld [vmem:[#allocation7 + $0xc0] sm:$0xff]  ;;  %v323_v9 = vld [vmem:[#allocation7 + $0xb8] sm:$0xff]  ;;  %s706_s8 = sshll.u32 %s580_s7, 7  ;;  %s569_s18 = scalar_lea.sflag [#allocation6], %s1211_s30 }
  0x60   : > { %378 = vmatprep.subr.mxu0 %v329_v3  ;;  %v322_v10 = vld [vmem:[#allocation7 + $0xb0] sm:$0xff]  ;;  %v321_v11 = vld [vmem:[#allocation7 + $0xa8] sm:$0xff]  ;;  %v320_v12 = vld [vmem:[#allocation7 + $0xa0] sm:$0xff]  ;;  %s928_s22 = scalar_lea.vmem %s585_s10, 128  ;;  %s1038_s26 = smov [#allocation10]  }
  0x61   : > { %379 = vmatpush1.msra.mxu0 %v328_v4  ;;  %v319_v13 = vld [vmem:[#allocation7 + $0x98] sm:$0xff]  ;;  %v318_v14 = vld [vmem:[#allocation7 + $0x90] sm:$0xff]  ;;  %v317_v15 = vld [vmem:[#allocation7 + $0x88] sm:$0xff]  ;;  %p929_p3 = scmp.ne.s32.totalorder %s585_s10, %s928_s22  ;;  %s932_s21 = sshll.u32 %s1038_s26, 4  ;;  %s933_s21 = int_to_ptr.vmem [resolvable:$false] %s932_s21 }
  0x62   : > { %380 = vmatprep.subr.mxu0 %v327_v5  ;;  %v316_v16 = vld [vmem:[#allocation7 + $0x80] sm:$0xff]  ;;  %v315_v17 = vld [vmem:[#allocation7 + $0x78] sm:$0xff]  ;;  %v314_v18 = vld [vmem:[#allocation7 + $0x70] sm:$0xff]  ;;  %s934_s15 = scalar_lea.vmem %s933_s21, 256  ;;  %p935_p0 = scmp.lt.s32.totalorder %s585_s10, %s933_s21 }
  0x63   : > { %381 = vmatpush1.msra.mxu0 %v326_v6  ;;  %v313_v19 = vld [vmem:[#allocation7 + $0x68] sm:$0xff]  ;;  %v312_v20 = vld [vmem:[#allocation7 + $0x60] sm:$0xff]  ;;  %v311_v21 = vld [vmem:[#allocation7 + $0x58] sm:$0xff]  ;;  %p930_p8 = pnand %p929_p3, %p1174_p9  ;;  %p936_p13 = scmp.lt.s32.totalorder %s934_s15, %s928_s22 }
  0x64   : > { %382 = vmatprep.subr.mxu0 %v325_v7  ;;  %v310_v22 = vld [vmem:[#allocation7 + $0x50] sm:$0xff]  ;;  %v309_v23 = vld [vmem:[#allocation7 + $0x48] sm:$0xff]  ;;  %v308_v24 = vld [vmem:[#allocation7 + $0x40] sm:$0xff]  ;;  %s582_s14 = scalar_lea.hbm %s1326_s1, %s706_s8 }
  0x65   : > { %383 = vmatpush1.msra.mxu0 %v324_v8  ;;  %v307_v25 = vld [vmem:[#allocation7 + $0x38] sm:$0xff]  ;;  %v1231_v27 = vld [vmem:[#allocation2] sm:$0x1]  ;;  %v483_v30 = vld [vmem:[#allocation9 + $0xf0] sm:$0xff]  ;;  %p931_p12 = pneg %p930_p8  ;;  %p937_p1 = por %p936_p13, %p935_p0 }
  0x66   : > { %384 = vmatprep.subr.mxu0 %v323_v9  ;;  %v1229_v26 = vld [vmem:[%s1215_s16] sm:$0xff]  ;;  %v305_v33 = vld [vmem:[#allocation7 + $0x28] sm:$0xff]  ;;  %v304_v35 = vld [vmem:[#allocation7 + $0x20] sm:$0xff] }
  0x67   : > { %385 = vmatpush1.msra.mxu0 %v322_v10  ;;  %440 = vmatprep.mubr.f32.mxu0 %v1229_v26  ;;  %566 = vst [vmem:[#allocation2 - $0x7] sm:$0x80] %v1229_v26  ;;  %v484_v28 = vld [vmem:[#allocation9 + $0xf8] sm:$0xff]  ;;  %v306_v31 = vld [vmem:[#allocation7 + $0x30] sm:$0xff]  ;;  %v482_v34 = vld [vmem:[#allocation9 + $0xe8] sm:$0xff]  ;;  %p938_p5 = pnand %p937_p1, %p931_p12 }
  0x68   : > { %386 = vmatprep.subr.mxu0 %v321_v11  ;;  %v468_v29 = vld [vmem:[#allocation9 + $0x78] sm:$0xff]  ;;  %709 = vmatprep.subr.mxu1 %v484_v28  ;;  %v467_v32 = vld [vmem:[#allocation9 + $0x70] sm:$0xff]  ;;  %v466_v36 = vld [vmem:[#allocation9 + $0x68] sm:$0xff] }
  0x69   : > { %387 = vmatpush1.msra.mxu0 %v320_v12  ;;  %710 = vmatpush3.msra.mxu1 %v468_v29  ;;  %v303_v37 = vld [vmem:[#allocation7 + $0x18] sm:$0xff]  ;;  %v481_v38 = vld [vmem:[#allocation9 + $0xe0] sm:$0xff]  ;;  %v302_v39 = vld [vmem:[#allocation7 + $0x10] sm:$0xff] }
  0x6a   : > { %388 = vmatprep.subr.mxu0 %v319_v13  ;;  %711 = vmatprep.subr.mxu1 %v483_v30  ;;  %v465_v40 = vld [vmem:[#allocation9 + $0x60] sm:$0xff]  ;;  %v301_v41 = vld [vmem:[#allocation7 + $0x8] sm:$0xff]  ;;  %v480_v42 = vld [vmem:[#allocation9 + $0xd8] sm:$0xff] }
  0x6b   : > { %389 = vmatpush1.msra.mxu0 %v318_v14  ;;  %712 = vmatpush3.msra.mxu1 %v467_v32  ;;  %v300_v43 = vld [vmem:[#allocation7] sm:$0xff]  ;;  %v464_v44 = vld [vmem:[#allocation9 + $0x58] sm:$0xff]  ;;  %v479_v46 = vld [vmem:[#allocation9 + $0xd0] sm:$0xff] }
  0x6c   : > { %390 = vmatprep.subr.mxu0 %v317_v15  ;;  %713 = vmatprep.subr.mxu1 %v482_v34  ;;  %v363_v45 = vld [vmem:[#allocation7 + $0x1f8] sm:$0xff]  ;;  %v362_v47 = vld [vmem:[#allocation7 + $0x1f0] sm:$0xff]  ;;  %v361_v49 = vld [vmem:[#allocation7 + $0x1e8] sm:$0xff] }
  0x6d   : > { %391 = vmatpush1.msra.mxu0 %v316_v16  ;;  %714 = vmatpush3.msra.mxu1 %v466_v36  ;;  %v463_v48 = vld [vmem:[#allocation9 + $0x50] sm:$0xff]  ;;  %v478_v50 = vld [vmem:[#allocation9 + $0xc8] sm:$0xff]  ;;  %v360_v51 = vld [vmem:[#allocation7 + $0x1e0] sm:$0xff] }
  0x6e   : > { %392 = vmatprep.subr.mxu0 %v315_v17  ;;  %715 = vmatprep.subr.mxu1 %v481_v38  ;;  %v462_v52 = vld [vmem:[#allocation9 + $0x48] sm:$0xff]  ;;  %v359_v53 = vld [vmem:[#allocation7 + $0x1d8] sm:$0xff]  ;;  %v477_v54 = vld [vmem:[#allocation9 + $0xc0] sm:$0xff] }
  0x6f   : > { %393 = vmatpush1.msra.mxu0 %v314_v18  ;;  %716 = vmatpush3.msra.mxu1 %v465_v40  ;;  %v358_v55 = vld [vmem:[#allocation7 + $0x1d0] sm:$0xff]  ;;  %v461_v56 = vld [vmem:[#allocation9 + $0x40] sm:$0xff]  ;;  %v357_v57 = vld [vmem:[#allocation7 + $0x1c8] sm:$0xff] }
  0x70   : > { %394 = vmatprep.subr.mxu0 %v313_v19  ;;  %717 = vmatprep.subr.mxu1 %v480_v42  ;;  %v476_v58 = vld [vmem:[#allocation9 + $0xb8] sm:$0xff]  ;;  %v356_v59 = vld [vmem:[#allocation7 + $0x1c0] sm:$0xff]  ;;  %v475_v62 = vld [vmem:[#allocation9 + $0xb0] sm:$0xff] }
  0x71   : > { %395 = vmatpush1.msra.mxu0 %v312_v20  ;;  %718 = vmatpush3.msra.mxu1 %v464_v44  ;;  %v460_v60 = vld [vmem:[#allocation9 + $0x38] sm:$0xff]  ;;  %v354_v63 = vld [vmem:[#allocation7 + $0x1b0] sm:$0xff]  ;;  %v353_v1 = vld [vmem:[#allocation7 + $0x1a8] sm:$0xff] }
  0x72   : > { %396 = vmatprep.subr.mxu0 %v311_v21  ;;  %719 = vmatprep.subr.mxu1 %v479_v46  ;;  %v355_v61 = vld [vmem:[#allocation7 + $0x1b8] sm:$0xff]  ;;  %v459_v0 = vld [vmem:[#allocation9 + $0x30] sm:$0xff]  ;;  %v474_v2 = vld [vmem:[#allocation9 + $0xa8] sm:$0xff] }
  0x73   : > { %397 = vmatpush1.msra.mxu0 %v310_v22  ;;  %720 = vmatpush3.msra.mxu1 %v463_v48  ;;  %v352_v3 = vld [vmem:[#allocation7 + $0x1a0] sm:$0xff]  ;;  %v458_v4 = vld [vmem:[#allocation9 + $0x28] sm:$0xff]  ;;  %v351_v5 = vld [vmem:[#allocation7 + $0x198] sm:$0xff] }
  0x74   : > { %398 = vmatprep.subr.mxu0 %v309_v23  ;;  %721 = vmatprep.subr.mxu1 %v478_v50  ;;  %v473_v6 = vld [vmem:[#allocation9 + $0xa0] sm:$0xff]  ;;  %v350_v7 = vld [vmem:[#allocation7 + $0x190] sm:$0xff]  ;;  %v349_v9 = vld [vmem:[#allocation7 + $0x188] sm:$0xff] }
  0x75   : > { %399 = vmatpush1.msra.mxu0 %v308_v24  ;;  %722 = vmatpush3.msra.mxu1 %v462_v52  ;;  %v457_v8 = vld [vmem:[#allocation9 + $0x20] sm:$0xff]  ;;  %v347_v11 = vld [vmem:[#allocation7 + $0x178] sm:$0xff]  ;;  %v346_v12 = vld [vmem:[#allocation7 + $0x170] sm:$0xff]  ;;  %v296_v24 = vrot.slane %v1229_v26, 7 }
  0x76   : > { %400 = vmatprep.subr.mxu0 %v307_v25  ;;  %723 = vmatprep.subr.mxu1 %v477_v54  ;;  %v348_v10 = vld [vmem:[#allocation7 + $0x180] sm:$0xff]  ;;  %v345_v13 = vld [vmem:[#allocation7 + $0x168] sm:$0xff]  ;;  %v343_v15 = vld [vmem:[#allocation7 + $0x158] sm:$0xff] }
  0x77   : > { %401 = vmatpush1.msra.mxu0 %v306_v31  ;;  %724 = vmatpush3.msra.mxu1 %v461_v56  ;;  %v344_v14 = vld [vmem:[#allocation7 + $0x160] sm:$0xff]  ;;  %v342_v16 = vld [vmem:[#allocation7 + $0x150] sm:$0xff]  ;;  %v341_v17 = vld [vmem:[#allocation7 + $0x148] sm:$0xff]  ;;  %v299_v30 = vsel %vm298_vm0, %v1231_v27, %v296_v24  ;;  %v366_v27 = vlaneseq }
  0x78   : > { %402 = vmatprep.subr.mxu0 %v305_v33  ;;  %725 = vmatprep.subr.mxu1 %v476_v58  ;;  %v340_v18 = vld [vmem:[#allocation7 + $0x140] sm:$0xff]  ;;  %v339_v19 = vld [vmem:[#allocation7 + $0x138] sm:$0xff]  ;;  %v338_v20 = vld [vmem:[#allocation7 + $0x130] sm:$0xff] }
  0x79   : > { %403 = vmatpush1.msra.mxu0 %v304_v35  ;;  %726 = vmatpush3.msra.mxu1 %v460_v60  ;;  %v337_v21 = vld [vmem:[#allocation7 + $0x128] sm:$0xff]  ;;  %v336_v22 = vld [vmem:[#allocation7 + $0x120] sm:$0xff]  ;;  %v335_v23 = vld [vmem:[#allocation7 + $0x118] sm:$0xff]  ;;  %v367_v38 = vshrl.u32 %v366_v27, 7 }
  0x7a   : > { %404 = vmatprep.subr.mxu0 %v303_v37  ;;  %727 = vmatprep.subr.mxu1 %v475_v62  ;;  %v334_v25 = vld [vmem:[#allocation7 + $0x110] sm:$0xff]  ;;  %v333_v28 = vld [vmem:[#allocation7 + $0x108] sm:$0xff]  ;;  %v332_v29 = vld [vmem:[#allocation7 + $0x100] sm:$0xff] }
  0x7b   : > { %405 = vmatpush1.msra.mxu0 %v302_v39  ;;  %728 = vmatpush3.msra.mxu1 %v459_v0  ;;  %v472_v31 = vld [vmem:[#allocation9 + $0x98] sm:$0xff]  ;;  %v471_v33 = vld [vmem:[#allocation9 + $0x90] sm:$0xff]  ;;  %v470_v34 = vld [vmem:[#allocation9 + $0x88] sm:$0xff]  ;;  %v368_v39 = vsub.s32 0, %v367_v38  ;;  %v372_v48 = vsub.s32 1, %v367_v38 }
  0x7c   : > { %406 = vmatprep.subr.mxu0 %v301_v41  ;;  %729 = vmatprep.subr.mxu1 %v474_v2  ;;  %v456_v32 = vld [vmem:[#allocation9 + $0x18] sm:$0xff]  ;;  %v455_v26 = vld [vmem:[#allocation9 + $0x10] sm:$0xff]  ;;  %v454_v35 = vld [vmem:[#allocation9 + $0x8] sm:$0xff] }
  0x7d   : > { %407 = vmatpush1.msra.mxu0 %v300_v43  ;;  %730 = vmatpush3.msra.mxu1 %v458_v4  ;;  %v469_v36 = vld [vmem:[#allocation9 + $0x80] sm:$0xff]  ;;  %v448_v44 = vld [vmem:[#allocation3] sm:$0x1] }
  0x7e   : > { %408 = vmatprep.subr.mxu0 %v363_v45  ;;  %731 = vmatprep.subr.mxu1 %v473_v6  ;;  %v453_v37 = vld [vmem:[#allocation9] sm:$0xff] }
  0x7f   : > { %409 = vmatpush2.msra.mxu0 %v362_v47  ;;  %732 = vmatpush3.msra.mxu1 %v457_v8  ;;  %v364_v40 = vld [vmem:[%s1295_s2] sm:$0x3] }
  0x80   : > { %410 = vmatprep.subr.mxu0 %v361_v49  ;;  %733 = vmatprep.subr.mxu1 %v472_v31  ;;  %v369_v41 = vrot.slane %v364_v40, %v368_v39  ;;  %v703_v50 = vld [vmem:[%s1297_s4] ss:$0 sm:$0xff]  ;;  %v373_v52 = vrot.slane %v364_v40, %v372_v48 }
  0x81   : > { %411 = vmatpush2.msra.mxu0 %v360_v51  ;;  %734 = vmatpush3.msra.mxu1 %v456_v32 }
  0x82   : > { %412 = vmatprep.subr.mxu0 %v359_v53  ;;  %735 = vmatprep.subr.mxu1 %v471_v33 }
  0x83   : > { %413 = vmatpush2.msra.mxu0 %v358_v55  ;;  %736 = vmatpush3.msra.mxu1 %v455_v26 }
  0x84   : > { %414 = vmatprep.subr.mxu0 %v357_v57  ;;  %737 = vmatprep.subr.mxu1 %v470_v34 }
  0x85   : > { %415 = vmatpush2.msra.mxu0 %v356_v59  ;;  %738 = vmatpush3.msra.mxu1 %v454_v35 }
  0x86   : > { %416 = vmatprep.subr.mxu0 %v355_v61  ;;  %739 = vmatprep.subr.mxu1 %v469_v36 }
  0x87   : > { %417 = vmatpush2.msra.mxu0 %v354_v63  ;;  %740 = vmatpush3.msra.mxu1 %v453_v37 }
  0x88   : > { %418 = vmatprep.subr.mxu0 %v353_v1 }
  0x89   : > { %419 = vmatpush2.msra.mxu0 %v352_v3 }
  0x8a   : > { %420 = vmatprep.subr.mxu0 %v351_v5 }
  0x8b   : > { %421 = vmatpush2.msra.mxu0 %v350_v7 }
  0x8c   : > { %422 = vmatprep.subr.mxu0 %v349_v9 }
  0x8d   : > { %423 = vmatpush2.msra.mxu0 %v348_v10 }
  0x8e   : > { %424 = vmatprep.subr.mxu0 %v347_v11 }
  0x8f   : > { %425 = vmatpush2.msra.mxu0 %v346_v12 }
  0x90   : > { %426 = vmatprep.subr.mxu0 %v345_v13 }
  0x91   : > { %427 = vmatpush2.msra.mxu0 %v344_v14 }
  0x92   : > { %428 = vmatprep.subr.mxu0 %v343_v15 }
  0x93   : > { %429 = vmatpush2.msra.mxu0 %v342_v16 }
  0x94   : > { %430 = vmatprep.subr.mxu0 %v341_v17 }
  0x95   : > { %431 = vmatpush2.msra.mxu0 %v340_v18 }
  0x96   : > { %432 = vmatprep.subr.mxu0 %v339_v19 }
  0x97   : > { %433 = vmatpush2.msra.mxu0 %v338_v20 }
  0x98   : > { %434 = vmatprep.subr.mxu0 %v337_v21 }
  0x99   : > { %435 = vmatpush2.msra.mxu0 %v336_v22 }
  0x9a   : > { %436 = vmatprep.subr.mxu0 %v335_v23 }
  0x9b   : > { %437 = vmatpush2.msra.mxu0 %v334_v25 }
  0x9c   : > { %438 = vmatprep.subr.mxu0 %v333_v28 }
  0x9d   : > { %439 = vmatpush2.msra.mxu0 %v332_v29 }
  0x9e   : > { %441 = vmatmul.mubr.f32.vlgmr.msra.gmra.mxu0 %v299_v30 }
 0x15e   : > { %v442_v42 = vpop.f32.mrf.mxu0 }
 0x15f   : > { %v443_v43 = vadd.f32 %v442_v42, %v369_v41 }
 0x160   : > { %v444_v54 = vpop.f32.mrf.mxu0 }
 0x161   : > { %v447_v45 = vmax.f32 %v443_v43, 0.0  ;;  %v445_v56 = vadd.f32 %v444_v54, %v373_v52 }
 0x163   : > { %v450_v46 = vrot.slane %v447_v45, 7  ;;  %556 = vmatprep.mubr.f32.mxu1 %v447_v45  ;;  %567 = vst [vmem:[#allocation3 - $0x7] sm:$0x80] %v447_v45 }
 0x165   : > { %v452_v47 = vsel %vm298_vm0, %v448_v44, %v450_v46 }
 0x166   : > { %557 = vmatmul.mubr.f32.vlgmr.msra.gmra.mxu1 %v452_v47 }
 0x226   : > { %v741_v49 = vpop.f32.mrf.mxu1 }
 0x228   : > { %v742_v51 = vpop.f32.mrf.mxu1 }
 0x229   : > { %v743_v53 = vadd.f32 %v742_v51, %v741_v49 }
 0x22b   : > { %v559_v55 = vadd.f32 %v743_v53, %v703_v50 }
 0x22d   : > { %v562_v57 = vmax.f32 %v559_v55, 0.0 }
 0x22f   : > { %v563_v58 = vadd.f32 %v562_v57, %v445_v56 }
 0x231   : > { %v564_v59 = vmax.f32 %v563_v58, 0.0 }
 0x233   : > { %565 = vst [vmem:[%s1225_s3] sm:$0xff] %v564_v59 }
 0x234   : > { %941 = shalt.err (!%p938_p5)
}
 0x235   : > { %s942_s16 = scalar_lea.hbm %s582_s14, 128  ;;  %s946_s5 = scalar_lea.hbm %s1326_s1, 512 }
 0x236   : > { %p943_p10 = scmp.ne.s32.totalorder %s582_s14, %s942_s16  ;;  %p947_p11 = scmp.lt.s32.totalorder %s582_s14, %s1326_s1 }
 0x237   : > { %p948_p6 = scmp.lt.s32.totalorder %s946_s5, %s942_s16 }
 0x238   : > { %p944_p2 = pnand %p943_p10, %p1174_p9 }
 0x239   : > { %p949_p7 = por %p948_p6, %p947_p11 }
 0x23a   : > { %p945_p4 = pneg %p944_p2 }
 0x23c   : > { %p950_p3 = pnand %p949_p7, %p945_p4 }
 0x23e   : > { %953 = shalt.err (!%p950_p3)
}
 0x23f   : > { %754 = dma.vmem_to_hbm [thread:$0]  (%p1174_p9), %s585_s10, 128, %s582_s14, %s569_s18  }
 0x240 PF: > { %s1327_s6 = sld [smem:[#allocation14_spill]]  ;;  %p776_p8 = scmp.ge.s32.totalorder %s1028_s25, 2 }
 0x241   : > { %s1328_s11 = sld [smem:[#allocation15_spill]] }
 0x246   : > { %s596_s7 = sand.u32 1, %s1327_s6  }
 0x247   : > { %p1329_p12 = scmp.ne.s32.totalorder %s1328_s11, 0  ;;  %s597_s8 = scalar_lea.sflag [#allocation6], %s596_s7 }
 0x249   : > { %p768_p0 = pnand %p776_p8, %p1329_p12 }
 0x24b   : > { %p769_p13 = pneg %p768_p0 }
 0x24d   : > { %995 = dma.done.wait (%p769_p13), %s597_s8, 128  }
 0x24e   : > { %997 = vsyncadd (%p769_p13), %s597_s8, 4294967168  ;;  %s22_s25 = sadd.s32 1, %s1028_s25   ;;  %s1330_s27 = sld [smem:[#allocation16_spill]] }
 0x24f   : > { %p19_p1 = scmp.ge.s32.totalorder %s22_s25, 6   ;;  %s1331_s18 = smov %s1004_s19 }
 0x250   : > { %s1332_s19 = smov %s1008_s20  ;;  %s1333_s20 = smov %s1191_s12 }
 0x251   : > { %s1334_s21 = smov %s1020_s23  ;;  %s1335_s22 = smov %s1024_s24 }
 0x252   : > { %s1337_s24 = smov %s1343_s13  ;;  %21 = sbr.rel (!%p19_p1) target bundleno = 12 (0xc), region = 97 }
 0x254   : > { %s1336_s23 = smov %s1330_s27 }
 0x257   :  { %602 = vsyncpa [#allocation5], 1 }
 0x258   :  { %604 = vsyncpa [#allocation5 + $0x1], 1 }
 0x259   :  { %605 = vsyncpa [#allocation8], 1 }
 0x25a   :  { %606 = vsyncpa [#allocation6], 1 }
 0x25b   :  { %608 = vsyncpa [#allocation6 + $0x1], 1 }

</bundles_post_ra>
